<compile_context>
chip_gen: v7x
topology: tpu7x:2x2x1
jax: 0.10.0
libtpu: 0.0.40
codegen_flags: <defaults>
</compile_context>

<pallas_src>
from functools import partial

import numpy as np
import jax
import jax.numpy as jnp
from jax import lax
from jax.experimental import pallas as pl
from jax.experimental.pallas import tpu as pltpu


def _round_up(a, m):
    return (a + m - 1) // m * m


def _tpu_memory_info():
    """(vmem_capacity_bytes, tensorcores_per_chip) with conservative fallbacks."""
    try:
        kind = jax.devices()[0].device_kind.lower()
    except Exception:
        kind = ""
    if "v7" in kind:
        return 64 << 20, 2            # v7x: 64 MiB VMEM per TC, 2 TCs per chip
    if ("v4" in kind) or ("v5p" in kind):
        return 128 << 20, 2           # megacore parts
    return 128 << 20, 1               # v5e / v6e (and unknown devices)


def _cheby_kan_ln_kernel(x_ref, w_ref, g_ref, b_ref, o_ref, *,
                         degree, epsilon, out_dim, ln_eps):
    # x_ref : (TB, I)            batch tile of activations (any float dtype)
    # w_ref : (D+1, I, O_pad)    Chebyshev coefficients, degree-major planes
    # g_ref : (1, O_pad)         LayerNorm gamma (padded with 1)
    # b_ref : (1, O_pad)         LayerNorm beta  (padded with 0)
    # o_ref : (TB, O_pad)        output tile (x.dtype)
    x = x_ref[...].astype(jnp.float32)
    t = jnp.clip(jnp.tanh(x), -1.0 + epsilon, 1.0 - epsilon)
    w_dt = w_ref.dtype

    # Chebyshev recurrence T_0=1, T_1=t, T_d = 2 t T_{d-1} - T_{d-2} (pure VPU,
    # mathematically identical to cos(d*acos(t))), fused with per-degree
    # dot-accumulation against static (hence free) planes of the weight ref.
    # Each dot is lane-aligned; no materialized (TB, (D+1)*I) concat slab.
    t_prev = jnp.ones_like(t)                                        # T_0
    y = jnp.dot(t_prev.astype(w_dt), w_ref[0],
                preferred_element_type=jnp.float32)                  # (TB, O_pad)
    if degree >= 1:
        t_cur = t                                                    # T_1
        y = y + jnp.dot(t_cur.astype(w_dt), w_ref[1],
                        preferred_element_type=jnp.float32)
        for d in range(2, degree + 1):
            t_next = 2.0 * t * t_cur - t_prev                        # T_d
            y = y + jnp.dot(t_next.astype(w_dt), w_ref[d],
                            preferred_element_type=jnp.float32)
            t_prev, t_cur = t_cur, t_next

    # Fused LayerNorm over the REAL out_dim columns. Padded weight columns are
    # exactly zero => padded y columns are exactly zero => the plain row sum is
    # already the sum over the real columns. The centered term is masked so the
    # variance is a true two-pass sum((y-mean)^2)/out_dim (no cancellation).
    inv_n = jnp.float32(1.0 / out_dim)
    mean = jnp.sum(y, axis=-1, keepdims=True) * inv_n
    col = lax.broadcasted_iota(jnp.int32, y.shape, 1)
    diff = jnp.where(col < out_dim, y - mean, 0.0)
    var = jnp.sum(diff * diff, axis=-1, keepdims=True) * inv_n
    inv = lax.rsqrt(var + jnp.float32(ln_eps))
    o_ref[...] = ((y - mean) * inv * g_ref[...] + b_ref[...]).astype(o_ref.dtype)


def prepare_cheby_kan_ln_params(cheby_coeffs, ln_gamma, ln_beta,
                                weight_dtype=jnp.float32):
    """One-time parameter re-layout (hoisted out of the per-call path).

    (I, O, D+1) -> (D+1, I, O_pad) degree-major planes; output padded to a
    lane-dense multiple of 128 with zeros (gamma padded with 1, beta with 0).
    """
    input_dim, output_dim, dp1 = cheby_coeffs.shape
    o_pad = _round_up(output_dim, 128)
    w = jnp.transpose(cheby_coeffs, (2, 0, 1)).astype(weight_dtype)  # (D+1, I, O)
    w = jnp.pad(w, ((0, 0), (0, 0), (0, o_pad - output_dim)))
    g = jnp.pad(ln_gamma.astype(jnp.float32), (0, o_pad - output_dim),
                constant_values=1.0).reshape(1, o_pad)
    b = jnp.pad(ln_beta.astype(jnp.float32),
                (0, o_pad - output_dim)).reshape(1, o_pad)
    return w, g, b, int(output_dim)


def cheby_kan_layernorm_forward(x, w_planes, ln_gamma_pad, ln_beta_pad, output_dim,
                                *, epsilon=1e-6, ln_eps=1e-5, tile_b_cap=2048):
    """x: (..., input_dim) -> (B, output_dim), B = prod(leading dims)."""
    dp1, input_dim, o_pad = w_planes.shape
    degree = dp1 - 1
    assert x.shape[-1] == input_dim

    x2d = x.reshape(-1, input_dim)      # mirrors torch's x.view(-1, input_dim)
    B = x2d.shape[0]
    out_dtype = x2d.dtype

    # --- batch tile derived from the VMEM budget (not a small fixed default) ---
    vmem_cap, num_tc = _tpu_memory_info()
    x_it = np.dtype(x2d.dtype).itemsize
    o_it = np.dtype(out_dtype).itemsize
    w_it = np.dtype(w_planes.dtype).itemsize
    per_row = (2 * input_dim * x_it     # x block, double-buffered
               + 2 * o_pad * o_it       # out block, double-buffered
               + 4 * input_dim * 4      # t / T_{d-2} / T_{d-1} / T_d temporaries (f32)
               + 2 * o_pad * 4)         # y accumulator + LayerNorm temporaries (f32)
    fixed = 2 * (dp1 * input_dim * o_pad * w_it + 2 * o_pad * 4)  # w + gamma + beta
    budget = int(0.6 * vmem_cap)
    tb = max(8, (budget - fixed) // per_row)
    tb = min(tb, tile_b_cap)
    if num_tc > 1:
        # Keep >= num_tc grid steps so ("parallel",) shards the batch across TCs.
        tb = min(tb, _round_up(pl.cdiv(B, num_tc), 8))
    tb = min(tb, _round_up(B, 8))
    tb = max(8, (tb // 8) * 8)
    grid_b = pl.cdiv(B, tb)             # ragged last tile: no jnp.pad copy of x;
                                        # Pallas masks the OOB rows on write-back.

    est = fixed + per_row * tb
    cap = (48 << 20) if vmem_cap <= (64 << 20) else (100 << 20)
    vmem_limit = int(min(cap, max(32 << 20, 2 * est)))

    kernel = partial(_cheby_kan_ln_kernel, degree=degree, epsilon=epsilon,
                     out_dim=output_dim, ln_eps=ln_eps)

    y = pl.pallas_call(
        kernel,
        out_shape=jax.ShapeDtypeStruct((B, o_pad), out_dtype),
        grid=(grid_b,),
        in_specs=[
            pl.BlockSpec((tb, input_dim), lambda i: (i, 0)),             # x tile
            pl.BlockSpec((dp1, input_dim, o_pad), lambda i: (0, 0, 0)),  # coeffs
            pl.BlockSpec((1, o_pad), lambda i: (0, 0)),                  # LN gamma
            pl.BlockSpec((1, o_pad), lambda i: (0, 0)),                  # LN beta
        ],
        out_specs=pl.BlockSpec((tb, o_pad), lambda i: (i, 0)),
        compiler_params=pltpu.CompilerParams(
            dimension_semantics=("parallel",),
            vmem_limit_bytes=vmem_limit,
        ),
    )(x2d, w_planes, ln_gamma_pad, ln_beta_pad)

    return y[:, :output_dim]


def reference_forward(x, cheby_coeffs, ln_gamma, ln_beta, degree,
                      epsilon=1e-6, ln_eps=1e-5):
    """Pure-JAX f32 reference matching the PyTorch module."""
    input_dim = cheby_coeffs.shape[0]
    x2d = x.reshape(-1, input_dim).astype(jnp.float32)
    t = jnp.clip(jnp.tanh(x2d), -1.0 + epsilon, 1.0 - epsilon)
    theta = jnp.arccos(t)
    d = jnp.arange(degree + 1, dtype=jnp.float32)
    feats = jnp.cos(theta[:, :, None] * d[None, None, :])           # (B, I, D+1)
    y = jnp.einsum('bid,iod->bo', feats, cheby_coeffs.astype(jnp.float32))
    mean = jnp.mean(y, axis=-1, keepdims=True)
    var = jnp.mean((y - mean) ** 2, axis=-1, keepdims=True)
    yn = (y - mean) / jnp.sqrt(var + ln_eps)
    return (yn * ln_gamma[None, :].astype(jnp.float32)
            + ln_beta[None, :].astype(jnp.float32))


if __name__ == "__main__":
    input_dim, output_dim, degree, batch = 32, 16, 4, 64

    key = jax.random.PRNGKey(0)
    kx, kw = jax.random.split(key)

    # nn.init.normal_(std = 1/(input_dim*(degree+1))); LayerNorm defaults gamma=1, beta=0.
    std = 1.0 / (input_dim * (degree + 1))
    cheby_coeffs = std * jax.random.normal(
        kw, (input_dim, output_dim, degree + 1), dtype=jnp.float32)
    ln_gamma = jnp.ones((output_dim,), dtype=jnp.float32)
    ln_beta = jnp.zeros((output_dim,), dtype=jnp.float32)
    x = jax.random.normal(kx, (batch, input_dim), dtype=jnp.float32)

    # One-time parameter re-layout, hoisted out of the per-call path.
    w_planes, g_pad, b_pad, out_dim = prepare_cheby_kan_ln_params(
        cheby_coeffs, ln_gamma, ln_beta)

    y = cheby_kan_layernorm_forward(x, w_planes, g_pad, b_pad, out_dim)
    y = jax.block_until_ready(y)
    assert y.shape == (batch, output_dim), y.shape

    # f32 operands end-to-end now -> tight tolerance vs the exact PyTorch formula.
    y_ref = reference_forward(x, cheby_coeffs, ln_gamma, ln_beta, degree)
    err = float(jnp.max(jnp.abs(y.astype(jnp.float32) - y_ref)))
    assert err < 1e-3, f"max abs err vs f32 reference: {err}"

    print("KERNEL_OK")
</pallas_src>

<mosaic_0001>
module attributes {stable_mosaic.version = 11 : i64} {
  func.func @_cheby_kan_ln_kernel(%arg0: i32, %arg1: memref<64x32xf32, #tpu.memory_space<vmem>>, %arg2: memref<5x32x128xf32, #tpu.memory_space<vmem>>, %arg3: memref<1x128xf32, #tpu.memory_space<vmem>>, %arg4: memref<1x128xf32, #tpu.memory_space<vmem>>, %arg5: memref<64x128xf32, #tpu.memory_space<vmem>>) attributes {dimension_semantics = [#tpu.dimension_semantics<parallel>], iteration_bounds = array<i64: 1>, scalar_prefetch = 0 : i64, scratch_operands = 0 : i64, tpu.core_type = #tpu.core_type<tc>, window_params = [{transform_indices = @transform_0, window_bounds = array<i64: 64, 32>}, {pipeline_mode = #tpu.pipeline_mode<synchronous>, transform_indices = @transform_1, window_bounds = array<i64: 5, 32, 128>}, {pipeline_mode = #tpu.pipeline_mode<synchronous>, transform_indices = @transform_2, window_bounds = array<i64: 1, 128>}, {pipeline_mode = #tpu.pipeline_mode<synchronous>, transform_indices = @transform_3, window_bounds = array<i64: 1, 128>}, {transform_indices = @transform_4, window_bounds = array<i64: 64, 128>}]} {
    %c0 = arith.constant 0 : index
    %c0_0 = arith.constant 0 : index
    %0 = vector.load %arg1[%c0, %c0_0] : memref<64x32xf32, #tpu.memory_space<vmem>>, vector<64x32xf32>
    %1 = math.tanh %0 : vector<64x32xf32>
    %cst = arith.constant -0.999998986 : f32
    %cst_1 = arith.constant 0.999998986 : f32
    %2 = vector.broadcast %cst : f32 to vector<64x32xf32>
    %3 = arith.maximumf %2, %1 : vector<64x32xf32>
    %4 = vector.broadcast %cst_1 : f32 to vector<64x32xf32>
    %5 = arith.minimumf %4, %3 : vector<64x32xf32>
    %cst_2 = arith.constant 1.000000e+00 : f32
    %6 = vector.broadcast %cst_2 : f32 to vector<64x32xf32>
    %c0_3 = arith.constant 0 : index
    %c0_4 = arith.constant 0 : index
    %c0_5 = arith.constant 0 : index
    %7 = vector.load %arg2[%c0_3, %c0_4, %c0_5] : memref<5x32x128xf32, #tpu.memory_space<vmem>>, vector<1x32x128xf32>
    %8 = vector.shape_cast %7 : vector<1x32x128xf32> to vector<32x128xf32>
    %cst_6 = arith.constant dense<0.000000e+00> : vector<64x128xf32>
    %9 = tpu.matmul %6, %8, %cst_6 {dimension_numbers = #tpu.dot_dimension_numbers<[1], [0], [0], [1], [0, 0, 1, 1], [], []>} : vector<64x32xf32>, vector<32x128xf32>, vector<64x128xf32> -> vector<64x128xf32>
    %c1 = arith.constant 1 : index
    %c0_7 = arith.constant 0 : index
    %c0_8 = arith.constant 0 : index
    %10 = vector.load %arg2[%c1, %c0_7, %c0_8] : memref<5x32x128xf32, #tpu.memory_space<vmem>>, vector<1x32x128xf32>
    %11 = vector.shape_cast %10 : vector<1x32x128xf32> to vector<32x128xf32>
    %cst_9 = arith.constant dense<0.000000e+00> : vector<64x128xf32>
    %12 = tpu.matmul %5, %11, %cst_9 {dimension_numbers = #tpu.dot_dimension_numbers<[1], [0], [0], [1], [0, 0, 1, 1], [], []>} : vector<64x32xf32>, vector<32x128xf32>, vector<64x128xf32> -> vector<64x128xf32>
    %13 = arith.addf %9, %12 : vector<64x128xf32>
    %cst_10 = arith.constant 2.000000e+00 : f32
    %14 = vector.broadcast %cst_10 : f32 to vector<64x32xf32>
    %15 = arith.mulf %14, %5 : vector<64x32xf32>
    %16 = arith.mulf %15, %5 : vector<64x32xf32>
    %17 = arith.subf %16, %6 : vector<64x32xf32>
    %c2 = arith.constant 2 : index
    %c0_11 = arith.constant 0 : index
    %c0_12 = arith.constant 0 : index
    %18 = vector.load %arg2[%c2, %c0_11, %c0_12] : memref<5x32x128xf32, #tpu.memory_space<vmem>>, vector<1x32x128xf32>
    %19 = vector.shape_cast %18 : vector<1x32x128xf32> to vector<32x128xf32>
    %cst_13 = arith.constant dense<0.000000e+00> : vector<64x128xf32>
    %20 = tpu.matmul %17, %19, %cst_13 {dimension_numbers = #tpu.dot_dimension_numbers<[1], [0], [0], [1], [0, 0, 1, 1], [], []>} : vector<64x32xf32>, vector<32x128xf32>, vector<64x128xf32> -> vector<64x128xf32>
    %21 = arith.addf %13, %20 : vector<64x128xf32>
    %cst_14 = arith.constant 2.000000e+00 : f32
    %22 = vector.broadcast %cst_14 : f32 to vector<64x32xf32>
    %23 = arith.mulf %22, %5 : vector<64x32xf32>
    %24 = arith.mulf %23, %17 : vector<64x32xf32>
    %25 = arith.subf %24, %5 : vector<64x32xf32>
    %c3 = arith.constant 3 : index
    %c0_15 = arith.constant 0 : index
    %c0_16 = arith.constant 0 : index
    %26 = vector.load %arg2[%c3, %c0_15, %c0_16] : memref<5x32x128xf32, #tpu.memory_space<vmem>>, vector<1x32x128xf32>
    %27 = vector.shape_cast %26 : vector<1x32x128xf32> to vector<32x128xf32>
    %cst_17 = arith.constant dense<0.000000e+00> : vector<64x128xf32>
    %28 = tpu.matmul %25, %27, %cst_17 {dimension_numbers = #tpu.dot_dimension_numbers<[1], [0], [0], [1], [0, 0, 1, 1], [], []>} : vector<64x32xf32>, vector<32x128xf32>, vector<64x128xf32> -> vector<64x128xf32>
    %29 = arith.addf %21, %28 : vector<64x128xf32>
    %cst_18 = arith.constant 2.000000e+00 : f32
    %30 = vector.broadcast %cst_18 : f32 to vector<64x32xf32>
    %31 = arith.mulf %30, %5 : vector<64x32xf32>
    %32 = arith.mulf %31, %25 : vector<64x32xf32>
    %33 = arith.subf %32, %17 : vector<64x32xf32>
    %c4 = arith.constant 4 : index
    %c0_19 = arith.constant 0 : index
    %c0_20 = arith.constant 0 : index
    %34 = vector.load %arg2[%c4, %c0_19, %c0_20] : memref<5x32x128xf32, #tpu.memory_space<vmem>>, vector<1x32x128xf32>
    %35 = vector.shape_cast %34 : vector<1x32x128xf32> to vector<32x128xf32>
    %cst_21 = arith.constant dense<0.000000e+00> : vector<64x128xf32>
    %36 = tpu.matmul %33, %35, %cst_21 {dimension_numbers = #tpu.dot_dimension_numbers<[1], [0], [0], [1], [0, 0, 1, 1], [], []>} : vector<64x32xf32>, vector<32x128xf32>, vector<64x128xf32> -> vector<64x128xf32>
    %37 = arith.addf %29, %36 : vector<64x128xf32>
    %cst_22 = arith.constant dense<0.000000e+00> : vector<64xf32>
    %38 = vector.multi_reduction <add>, %37, %cst_22 [1] : vector<64x128xf32> to vector<64xf32>
    %39 = vector.shape_cast %38 : vector<64xf32> to vector<64x1xf32>
    %cst_23 = arith.constant 6.250000e-02 : f32
    %40 = vector.broadcast %cst_23 : f32 to vector<64x1xf32>
    %41 = arith.mulf %39, %40 : vector<64x1xf32>
    %42 = tpu.iota {dimensions = array<i32: 1>} : vector<64x128xi32>
    %c16_i32 = arith.constant 16 : i32
    %43 = vector.broadcast %c16_i32 : i32 to vector<64x128xi32>
    %44 = arith.cmpi slt, %42, %43 : vector<64x128xi32>
    %45 = vector.broadcast %41 : vector<64x1xf32> to vector<64x128xf32>
    %46 = arith.subf %37, %45 : vector<64x128xf32>
    %cst_24 = arith.constant 0.000000e+00 : f32
    %47 = vector.broadcast %cst_24 : f32 to vector<64x128xf32>
    %48 = arith.select %44, %46, %47 : vector<64x128xi1>, vector<64x128xf32>
    %49 = arith.mulf %48, %48 : vector<64x128xf32>
    %cst_25 = arith.constant dense<0.000000e+00> : vector<64xf32>
    %50 = vector.multi_reduction <add>, %49, %cst_25 [1] : vector<64x128xf32> to vector<64xf32>
    %51 = vector.shape_cast %50 : vector<64xf32> to vector<64x1xf32>
    %cst_26 = arith.constant 6.250000e-02 : f32
    %52 = vector.broadcast %cst_26 : f32 to vector<64x1xf32>
    %53 = arith.mulf %51, %52 : vector<64x1xf32>
    %cst_27 = arith.constant 9.99999974E-6 : f32
    %54 = vector.broadcast %cst_27 : f32 to vector<64x1xf32>
    %55 = arith.addf %53, %54 : vector<64x1xf32>
    %56 = math.rsqrt %55 : vector<64x1xf32>
    %57 = vector.broadcast %41 : vector<64x1xf32> to vector<64x128xf32>
    %58 = arith.subf %37, %57 : vector<64x128xf32>
    %59 = vector.broadcast %56 : vector<64x1xf32> to vector<64x128xf32>
    %60 = arith.mulf %58, %59 : vector<64x128xf32>
    %c0_28 = arith.constant 0 : index
    %c0_29 = arith.constant 0 : index
    %61 = vector.load %arg3[%c0_28, %c0_29] : memref<1x128xf32, #tpu.memory_space<vmem>>, vector<1x128xf32>
    %62 = vector.broadcast %61 : vector<1x128xf32> to vector<64x128xf32>
    %63 = arith.mulf %60, %62 : vector<64x128xf32>
    %c0_30 = arith.constant 0 : index
    %c0_31 = arith.constant 0 : index
    %64 = vector.load %arg4[%c0_30, %c0_31] : memref<1x128xf32, #tpu.memory_space<vmem>>, vector<1x128xf32>
    %65 = vector.broadcast %64 : vector<1x128xf32> to vector<64x128xf32>
    %66 = arith.addf %63, %65 : vector<64x128xf32>
    %c0_32 = arith.constant 0 : index
    %c0_33 = arith.constant 0 : index
    %67 = vector.load %arg5[%c0_32, %c0_33] : memref<64x128xf32, #tpu.memory_space<vmem>>, vector<64x128xf32>
    tpu.vector_store %arg5[%c0_32, %c0_33], %66 {strides = array<i32>} : memref<64x128xf32, #tpu.memory_space<vmem>>, vector<64x128xf32>,
    return
  }
  func.func @transform_0(%arg0: i32) -> (i32, i32) {
    %c0_i32 = arith.constant 0 : i32
    %c0_i32_0 = arith.constant 0 : i32
    return %arg0, %c0_i32 : i32, i32
  }
  func.func @transform_1(%arg0: i32) -> (i32, i32, i32) {
    %c0_i32 = arith.constant 0 : i32
    %c0_i32_0 = arith.constant 0 : i32
    %c0_i32_1 = arith.constant 0 : i32
    %c0_i32_2 = arith.constant 0 : i32
    return %c0_i32, %c0_i32_0, %c0_i32_1 : i32, i32, i32
  }
  func.func @transform_2(%arg0: i32) -> (i32, i32) {
    %c0_i32 = arith.constant 0 : i32
    %c0_i32_0 = arith.constant 0 : i32
    %c0_i32_1 = arith.constant 0 : i32
    return %c0_i32, %c0_i32_0 : i32, i32
  }
  func.func @transform_3(%arg0: i32) -> (i32, i32) {
    %c0_i32 = arith.constant 0 : i32
    %c0_i32_0 = arith.constant 0 : i32
    %c0_i32_1 = arith.constant 0 : i32
    return %c0_i32, %c0_i32_0 : i32, i32
  }
  func.func @transform_4(%arg0: i32) -> (i32, i32) {
    %c0_i32 = arith.constant 0 : i32
    %c0_i32_0 = arith.constant 0 : i32
    return %arg0, %c0_i32 : i32, i32
  }
}

</mosaic_0001>

<bundles_post_ra>
// kernel: tpu_custom_call.1
= control target key start
LH: loop header
LB: loop body
LE: loop exit
PB: predicated region body
PF: predicated region fallthrough
CT: control target
= control target key end

     0   :  { %9 = vsyncpa [#allocation3], 0  ;;  %s1618_s0 = inlined_call_operand.vmem [shape: f32[64,32], index: 0, kind: input, shape index: {}]   ;;  %s1619_s1 = inlined_call_operand.hbm [shape: f32[5,32,128], index: 1, kind: input, shape index: {}]   ;;  %s1620_s2 = inlined_call_operand.vmem [shape: f32[1,128], index: 2, kind: input, shape index: {}]   ;;  %s1621_s3 = inlined_call_operand.vmem [shape: f32[1,128], index: 3, kind: input, shape index: {}]   ;;  %s1622_s4 = inlined_call_operand.hbm [shape: f32[64,128], index: 4, kind: output, shape index: {}]  }
   0x1   :  { %10 = vsyncpa [#allocation4], 0  ;;  %s1326_s15 = smov [#allocation2]   ;;  %s1278_s19 = scalar_lea.hbm %s1619_s1, 2560 }
   0x2   :  { %s18_s16 = sshll.u32 %s1326_s15, 4  ;;  %p1279_p0 = scmp.ne.s32.totalorder %s1619_s1, %s1278_s19  ;;  %s19_s16 = int_to_ptr.vmem [resolvable:$true] %s18_s16 }
   0x3   :  { %p1282_p1 = scmp.lt.u32.totalorder %s1278_s19, %s1619_s1 }
   0x5   :  { %p1284_p2 = pnand %p1282_p1, %p1279_p0 }
   0x7   :  { %1287 = shalt.err (!%p1284_p2)
}
   0x8   :  { %s1288_s24 = scalar_lea.vmem %s19_s16, 2560  ;;  %p1293_p4 = scmp.lt.s32.totalorder %s19_s16, %s19_s16 }
   0x9   :  { %p1289_p3 = scmp.ne.s32.totalorder %s19_s16, %s1288_s24  ;;  %p1294_p5 = scmp.lt.s32.totalorder %s1288_s24, %s1288_s24 }
   0xb   :  { %p1295_p6 = por %p1294_p5, %p1293_p4 }
   0xd   :  { %p1296_p7 = pnand %p1295_p6, %p1289_p3 }
   0xf   :  { %1299 = shalt.err (!%p1296_p7)
}
  0x10   :  { %s1327_s25 = smov 128   ;;  %s1328_s26 = smov 8  }
  0x11   :  { %24 = dma.hbm_to_vmem [thread:$0]  %s1619_s1, 2560, %s19_s16, [#allocation3], %s1327_s25, %s1327_s25, %s1328_s26  }
  0x12   :  { %1322 = dma.done.wait [#allocation3], 2560  }
  0x13   :  { %1323 = vsyncadd [#allocation3], 4294964736  ;;  %v69_v0 = vld [vmem:[#allocation2 + $0x20] sm:$0xff]  ;;  %v70_v1 = vld [vmem:[#allocation2 + $0x28] sm:$0xff]  ;;  %vm73_vm0 = vcmask 261120  }
  0x14   :  { %v71_v2 = vld [vmem:[#allocation2 + $0x30] sm:$0xff]  ;;  %v1165_v3 = vpack.c.bf16 %v70_v1, %v69_v0  ;;  %v72_v4 = vld [vmem:[#allocation2 + $0x38] sm:$0xff]  ;;  %v336_v5 = vld [vmem:[#allocation2 + $0x40] sm:$0xff] }
  0x15   :  { %v337_v6 = vld [vmem:[#allocation2 + $0x48] sm:$0xff]  ;;  %v1169_v7 = vpack.c.bf16 %v72_v4, %v71_v2  ;;  %v32_v9 = vld [vmem:[%s1618_s0] sm:$0xff]  ;;  %v338_v11 = vld [vmem:[#allocation2 + $0x50] sm:$0xff] }
  0x16   :  { %v1371_v8 = vpack.c.bf16 %v337_v6, %v336_v5  ;;  %v33_v10 = vld [vmem:[%s1618_s0 + $0x8] sm:$0xff]  ;;  %1166 = vmatprep.subr.bf16.mxu1 %v1165_v3  ;;  %1246 = vtanh.f32 %v32_v9  ;;  %v339_v12 = vld [vmem:[#allocation2 + $0x58] sm:$0xff]  ;;  %v34_v13 = vld [vmem:[%s1618_s0 + $0x10] sm:$0xff] }
  0x17   :  { %v35_v14 = vld [vmem:[%s1618_s0 + $0x18] sm:$0xff]  ;;  %1168 = vmatpush3.bf16.msra.mxu1 %v1165_v3  ;;  %1248 = vtanh.f32 %v33_v10  ;;  %v1386_v15 = vpack.c.bf16 %v339_v12, %v338_v11  ;;  %v494_v16 = vld [vmem:[#allocation2 + $0x60] sm:$0xff]  ;;  %v495_v17 = vld [vmem:[#allocation2 + $0x68] sm:$0xff] }
  0x18   :  { %1182 = vmatprep.subr.bf16.mxu0 %v1371_v8  ;;  %v36_v18 = vld [vmem:[%s1618_s0 + $0x20] sm:$0xff]  ;;  %1170 = vmatprep.subr.bf16.mxu1 %v1169_v7  ;;  %1250 = vtanh.f32 %v34_v13  ;;  %v37_v19 = vld [vmem:[%s1618_s0 + $0x28] sm:$0xff]  ;;  %v1396_v22 = vpack.c.bf16 %v495_v17, %v494_v16  ;;  %v38_v24 = vld [vmem:[%s1618_s0 + $0x30] sm:$0xff] }
  0x19   :  { %1184 = vmatpush3.bf16.msra.mxu0 %v1371_v8  ;;  %v64_v20 = vld [vmem:[#allocation2] sm:$0xff]  ;;  %v65_v21 = vld [vmem:[#allocation2 + $0x8] sm:$0xff]  ;;  %1252 = vtanh.f32 %v35_v14  ;;  %v39_v25 = vld [vmem:[%s1618_s0 + $0x38] sm:$0xff] }
  0x1a   :  { %1186 = vmatprep.subr.bf16.mxu0 %v1386_v15  ;;  %v1173_v23 = vpack.c.bf16 %v65_v21, %v64_v20  ;;  %1254 = vtanh.f32 %v36_v18  ;;  %v66_v26 = vld [vmem:[#allocation2 + $0x10] sm:$0xff]  ;;  %v67_v27 = vld [vmem:[#allocation2 + $0x18] sm:$0xff]  ;;  %v652_v62 = vld [vmem:[#allocation2 + $0x80] sm:$0xff] }
  0x1b   :  { %1172 = vmatpush3.bf16.msra.mxu1 %v1169_v7  ;;  %1256 = vtanh.f32 %v37_v19  ;;  %v1177_v33 = vpack.c.bf16 %v67_v27, %v66_v26  ;;  %v496_v37 = vld [vmem:[#allocation2 + $0x70] sm:$0xff]  ;;  %v497_v38 = vld [vmem:[#allocation2 + $0x78] sm:$0xff]  ;;  %v653_v63 = vld [vmem:[#allocation2 + $0x88] sm:$0xff] }
  0x1c   :  { %1174 = vmatprep.subr.bf16.mxu1 %v1173_v23  ;;  %1258 = vtanh.f32 %v38_v24  ;;  %v1193_v49 = vpack.c.bf16 %v497_v38, %v496_v37  ;;  %v1197_v11 = vpack.c.bf16 %v653_v63, %v652_v62  ;;  %v654_v12 = vld [vmem:[#allocation2 + $0x90] sm:$0xff]  ;;  %v655_v13 = vld [vmem:[#allocation2 + $0x98] sm:$0xff] }
  0x1d   :  { %1188 = vmatpush3.bf16.msra.mxu0 %v1386_v15  ;;  %1260 = vtanh.f32 %v39_v25 }
  0x1e   :  { %1190 = vmatprep.subr.bf16.mxu0 %v1396_v22 }
  0x20   :  { %v1247_v28 = vpop.eup %1246 }
  0x21   :  { %v1249_v29 = vpop.eup %1248  ;;  %v947_v30 = vclamps-f32 %v1247_v28, 0.999999 }
  0x22   :  { %v1251_v31 = vpop.eup %1250  ;;  %v948_v32 = vclamps-f32 %v1249_v29, 0.999999 }
  0x23   :  { %v1253_v34 = vpop.eup %1252  ;;  %1073 = vmatprep.mubr.msk.f32.mxu1 %vm73_vm0, %v947_v30  ;;  %v1407_v35 = vclamps-f32 %v1251_v31, 0.999999  ;;  %v1409_v36 = vmul.f32 2.0, %v947_v30 }
  0x24   :  { %v1255_v39 = vpop.eup %1254  ;;  %1074 = vmatmul.mubr.msk.f32.vlgmr.msra.gmra.mrb[0].mxu1 %vm73_vm0, %v948_v32  ;;  %v1412_v40 = vclamps-f32 %v1253_v34, 0.999999  ;;  %v1414_v41 = vmul.f32 2.0, %v948_v32 }
  0x25   :  { %v1257_v42 = vpop.eup %1256  ;;  %1076 = vmatprep.mubr.msk.f32.mxu1 %vm73_vm0, %v1407_v35  ;;  %v319_v43 = vmul.f32 %v947_v30, %v1409_v36  ;;  %v1419_v44 = vclamps-f32 %v1255_v39, 0.999999  ;;  %1176 = vmatpush3.bf16.msra.mxu1 %v1173_v23  ;;  %v1422_v45 = vmul.f32 2.0, %v1407_v35  ;;  %v1329_v23 = vmov 1.0  }
  0x26   :  { %v1259_v46 = vpop.eup %1258  ;;  %v320_v47 = vmul.f32 %v948_v32, %v1414_v41  ;;  %v1425_v48 = vclamps-f32 %v1257_v42, 0.999999  ;;  %v1428_v50 = vmul.f32 2.0, %v1412_v40  ;;  %1178 = vmatprep.subr.bf16.mxu1 %v1177_v33 }
  0x27   :  { %v1261_v51 = vpop.eup %1260  ;;  %v1430_v52 = vadd.f32 -1.0, %v319_v43  ;;  %v321_v53 = vmul.f32 %v1407_v35, %v1422_v45  ;;  %v1434_v54 = vclamps-f32 %v1259_v46, 0.999999  ;;  %v1437_v55 = vmul.f32 2.0, %v1419_v44 }
  0x28   :  { %1077 = vmatmul.mubr.msk.f32.gmra.mrb[2].mxu1 %vm73_vm0, %v1412_v40  ;;  %v1441_v56 = vadd.f32 -1.0, %v320_v47  ;;  %v322_v57 = vmul.f32 %v1412_v40, %v1428_v50  ;;  %v1445_v58 = vclamps-f32 %v1261_v51, 0.999999  ;;  %v1448_v59 = vmul.f32 2.0, %v1425_v48 }
  0x29   :  { %1113 = vmatprep.mubr.msk.f32.mxu0 %vm73_vm0, %v1430_v52  ;;  %v477_v60 = vmul.f32 %v1430_v52, %v1409_v36  ;;  %1079 = vmatprep.mubr.msk.f32.mxu1 %vm73_vm0, %v1419_v44  ;;  %v1456_v61 = vadd.f32 -1.0, %v321_v53  ;;  %v323_v0 = vmul.f32 %v1419_v44, %v1437_v55  ;;  %v1461_v1 = vmul.f32 2.0, %v1434_v54 }
  0x2a   :  { %1114 = vmatmul.mubr.msk.f32.vlgmr.msra.gmra.mrb[0].mxu0 %vm73_vm0, %v1441_v56  ;;  %v478_v2 = vmul.f32 %v1441_v56, %v1414_v41  ;;  %v1467_v3 = vadd.f32 -1.0, %v322_v57  ;;  %1180 = vmatpush3.bf16.msra.mxu1 %v1177_v33  ;;  %v324_v4 = vmul.f32 %v1425_v48, %v1448_v59  ;;  %v1472_v5 = vmul.f32 2.0, %v1445_v58 }
  0x2b   :  { %1192 = vmatpush3.bf16.msra.mxu0 %v1396_v22  ;;  %1116 = vmatprep.mubr.msk.f32.mxu0 %vm73_vm0, %v1456_v61  ;;  %v485_v6 = vsub.f32 %v477_v60, %v947_v30  ;;  %v479_v7 = vmul.f32 %v1456_v61, %v1422_v45  ;;  %v1479_v9 = vadd.f32 -1.0, %v323_v0  ;;  %v325_v10 = vmul.f32 %v1434_v54, %v1461_v1 }
  0x2c   :  { %1080 = vmatmul.mubr.msk.f32.gmra.mrb[4].mxu1 %vm73_vm0, %v1425_v48  ;;  %1194 = vmatprep.subr.bf16.mxu0 %v1193_v49  ;;  %v486_v14 = vsub.f32 %v478_v2, %v948_v32  ;;  %v480_v16 = vmul.f32 %v1467_v3, %v1428_v50  ;;  %v1492_v17 = vadd.f32 -1.0, %v324_v4  ;;  %v326_v18 = vmul.f32 %v1445_v58, %v1472_v5 }
  0x2d   :  { %1082 = vmatprep.mubr.msk.f32.mxu1 %vm73_vm0, %v1434_v54  ;;  %1205 = vmatprep.subr.bf16.mxu1 %v1371_v8  ;;  %v487_v19 = vsub.f32 %v479_v7, %v1407_v35  ;;  %v481_v20 = vmul.f32 %v1479_v9, %v1437_v55  ;;  %v977_v21 = vadd.f32 -1.0, %v325_v10  ;;  %v1201_v22 = vpack.c.bf16 %v655_v13, %v654_v12 }
  0x2e   :  { %1117 = vmatmul.mubr.msk.f32.gmra.mrb[2].mxu0 %vm73_vm0, %v1467_v3  ;;  %v488_v24 = vsub.f32 %v480_v16, %v1412_v40  ;;  %v482_v25 = vmul.f32 %v1492_v17, %v1448_v59  ;;  %v978_v26 = vadd.f32 -1.0, %v326_v18  ;;  %v635_v32 = vmul.f32 %v485_v6, %v1409_v36 }
  0x2f   :  { %1196 = vmatpush3.bf16.msra.mxu0 %v1193_v49  ;;  %1133 = vmatprep.mubr.msk.f32.mxu0 %vm73_vm0, %v485_v6  ;;  %v489_v27 = vsub.f32 %v481_v20, %v1419_v44  ;;  %v483_v28 = vmul.f32 %v977_v21, %v1461_v1  ;;  %v637_v35 = vmul.f32 %v487_v19, %v1422_v45  ;;  %v817_v7 = vlaneseq }
  0x30   :  { %1083 = vmatmul.mubr.msk.f32.gmra.mrb[6].mxu1 %vm73_vm0, %v1445_v58  ;;  %1198 = vmatprep.subr.bf16.mxu0 %v1197_v11  ;;  %v490_v29 = vsub.f32 %v482_v25, %v1425_v48  ;;  %v484_v30 = vmul.f32 %v978_v26, %v1472_v5  ;;  %v643_v34 = vsub.f32 %v635_v32, %v1430_v52 }
  0x31   :  { %1093 = vmatprep.mubr.msk.f32.mxu1 %vm73_vm0, %v1329_v23  ;;  %v491_v31 = vsub.f32 %v483_v28, %v1434_v54  ;;  %v645_v37 = vsub.f32 %v637_v35, %v1456_v61  ;;  %v639_v38 = vmul.f32 %v489_v27, %v1437_v55 }
  0x32   :  { %1134 = vmatmul.mubr.msk.f32.vlgmr.msra.gmra.mrb[0].mxu0 %vm73_vm0, %v486_v14  ;;  %v492_v33 = vsub.f32 %v484_v30, %v1445_v58  ;;  %v640_v40 = vmul.f32 %v490_v29, %v1448_v59 }
  0x33   :  { %1200 = vmatpush3.bf16.msra.mxu0 %v1197_v11  ;;  %1136 = vmatprep.mubr.msk.f32.mxu0 %vm73_vm0, %v487_v19  ;;  %v641_v42 = vmul.f32 %v491_v31, %v1461_v1 }
  0x34   :  { %1094 = vmatmul.mubr.msk.f32.vlgmr.msra.gmra.mrb[0].mxu1 %vm73_vm0, %v1329_v23  ;;  %1202 = vmatprep.subr.bf16.mxu0 %v1201_v22  ;;  %v648_v43 = vsub.f32 %v640_v40, %v1492_v17  ;;  %v642_v44 = vmul.f32 %v492_v33, %v1472_v5 }
  0x35   :  { %1096 = vmatprep.mubr.msk.f32.mxu1 %vm73_vm0, %v1329_v23  ;;  %1207 = vmatpush3.bf16.msra.mxu1 %v1371_v8  ;;  %v636_v8 = vmul.f32 %v486_v14, %v1414_v41  ;;  %v647_v41 = vsub.f32 %v639_v38, %v1479_v9  ;;  %v649_v45 = vsub.f32 %v641_v42, %v977_v21 }
  0x36   :  { %1137 = vmatmul.mubr.msk.f32.gmra.mrb[2].mxu0 %vm73_vm0, %v488_v24  ;;  %1206 = vmatprep.subr.bf16.mxu1 %v1386_v15  ;;  %v650_v46 = vsub.f32 %v642_v44, %v978_v26 }
  0x37   :  { %1139 = vmatprep.mubr.msk.f32.mxu0 %vm73_vm0, %v489_v27  ;;  %1204 = vmatpush3.bf16.msra.mxu0 %v1201_v22  ;;  %v644_v36 = vsub.f32 %v636_v8, %v1441_v56 }
  0x38   :  { %1097 = vmatmul.mubr.msk.f32.gmra.mrb[2].mxu1 %vm73_vm0, %v1329_v23 }
  0x39   :  { %1099 = vmatprep.mubr.msk.f32.mxu1 %vm73_vm0, %v1329_v23  ;;  %1208 = vmatpush3.bf16.msra.mxu1 %v1386_v15  ;;  %v638_v15 = vmul.f32 %v488_v24, %v1428_v50 }
  0x3a   :  { %1140 = vmatmul.mubr.msk.f32.gmra.mrb[4].mxu0 %vm73_vm0, %v490_v29 }
  0x3b   :  { %1142 = vmatprep.mubr.msk.f32.mxu0 %vm73_vm0, %v491_v31  ;;  %v646_v39 = vsub.f32 %v638_v15, %v1467_v3 }
  0x3c   :  { %1100 = vmatmul.mubr.msk.f32.gmra.mrb[4].mxu1 %vm73_vm0, %v1329_v23 }
  0x3d   :  { %1102 = vmatprep.mubr.msk.f32.mxu1 %vm73_vm0, %v1329_v23 }
  0x3e   :  { %1143 = vmatmul.mubr.msk.f32.gmra.mrb[6].mxu0 %vm73_vm0, %v492_v33 }
  0x3f   :  { %1153 = vmatprep.mubr.msk.f32.mxu0 %vm73_vm0, %v643_v34 }
  0x40   :  { %1103 = vmatmul.mubr.msk.f32.gmra.mrb[6].mxu1 %vm73_vm0, %v1329_v23 }
  0x41   :  { %1119 = vmatprep.mubr.msk.f32.mxu1 %vm73_vm0, %v1479_v9  ;;  %v818_v9 = vand.u32 127, %v817_v7 }
  0x42   :  { %1154 = vmatmul.mubr.msk.f32.vlgmr.msra.gmra.mrb[0].mxu0 %vm73_vm0, %v644_v36 }
  0x43   :  { %1156 = vmatprep.mubr.msk.f32.mxu0 %vm73_vm0, %v645_v37  ;;  %vm819_vm1 = vcmp.lt.s32.totalorder %v818_v9, 16  ;;  %v1004_v9 = vld [vmem:[%s1621_s3] ss:$0 sm:$0xff] }
  0x44   :  { %1120 = vmatmul.mubr.msk.f32.vlgmr.msra.gmra.mrb[4].mxu1 %vm73_vm0, %v1492_v17 }
  0x45   :  { %1122 = vmatprep.mubr.msk.f32.mxu1 %vm73_vm0, %v977_v21 }
  0x46   :  { %1157 = vmatmul.mubr.msk.f32.gmra.mrb[2].mxu0 %vm73_vm0, %v646_v39 }
  0x47   :  { %1159 = vmatprep.mubr.msk.f32.mxu0 %vm73_vm0, %v647_v41 }
  0x48   :  { %1123 = vmatmul.mubr.msk.f32.gmra.mrb[6].mxu1 %vm73_vm0, %v978_v26 }
  0x4a   :  { %1160 = vmatmul.mubr.msk.f32.gmra.mrb[4].mxu0 %vm73_vm0, %v648_v43 }
  0x4b   :  { %1162 = vmatprep.mubr.msk.f32.mxu0 %vm73_vm0, %v649_v45 }
  0x4e   :  { %1163 = vmatmul.mubr.msk.f32.gmra.mrb[6].mxu0 %vm73_vm0, %v650_v46 }
 0x107   :  { %v1095_v47 = vpop.f32.mrb[0].mxu1 }
 0x108   :  { %v272_v48 = vpop.f32.mrb[1].mxu1 }
 0x10b   :  { %v1098_v49 = vpop.f32.mrb[2].mxu1 }
 0x10c   :  { %v282_v50 = vpop.f32.mrb[3].mxu1 }
 0x115   :  { %v1155_v51 = vpop.f32.mrb[0].mxu0 }
 0x116   :  { %v1209_v52 = vadd.f32 %v1155_v51, %v1095_v47  ;;  %v746_v53 = vpop.f32.mrb[1].mxu0 }
 0x117   :  { %v1210_v54 = vadd.f32 %v746_v53, %v272_v48  ;;  %v1121_v55 = vpop.f32.mrb[4].mxu1 }
 0x118   :  { %795 = vadd.xlane.f32.xlu0 %v1209_v52  ;;  %v450_v56 = vpop.f32.mrb[5].mxu1 }
 0x119   :  { %v1158_v57 = vpop.f32.mrb[2].mxu0 }
 0x11a   :  { %v1211_v58 = vadd.f32 %v1158_v57, %v1098_v49  ;;  %v756_v59 = vpop.f32.mrb[3].mxu0 }
 0x11b   :  { %v1212_v60 = vadd.f32 %v756_v59, %v282_v50  ;;  %v1124_v61 = vpop.f32.mrb[6].mxu1 }
 0x11c   :  { %793 = vadd.xlane.f32.xlu0 %v1210_v54  ;;  %799 = vadd.xlane.f32.xlu1 %v1211_v58  ;;  %v460_v62 = vpop.f32.mrb[7].mxu1 }
 0x11d   :  { %v1161_v63 = vpop.f32.mrb[4].mxu0 }
 0x11e   :  { %v1213_v0 = vadd.f32 %v1161_v63, %v1121_v55  ;;  %v766_v1 = vpop.f32.mrb[5].mxu0 }
 0x11f   :  { %v1214_v2 = vadd.f32 %v766_v1, %v450_v56 }
 0x120   :  { %797 = vadd.xlane.f32.xlu1 %v1212_v60 }
 0x121   :  { %v1164_v3 = vpop.f32.mrb[6].mxu0  ;;  %801 = vadd.xlane.f32.xlu0 %v1214_v2 }
 0x122   :  { %v1215_v4 = vadd.f32 %v1164_v3, %v1124_v61  ;;  %v776_v5 = vpop.f32.mrb[7].mxu0 }
 0x123   :  { %v1216_v6 = vadd.f32 %v776_v5, %v460_v62 }
 0x124   :  { %803 = vadd.xlane.f32.xlu1 %v1213_v0 }
 0x125   :  { %805 = vadd.xlane.f32.xlu0 %v1216_v6 }
 0x128   :  { %807 = vadd.xlane.f32.xlu1 %v1215_v4 }
 0x1a5   :  { %v796_v10 = vpop.xlane.xlu0 %795 }
 0x1a6   :  { %v810_v11 = vmul.f32 0.0625, %v796_v10 }
 0x1a8   :  { %v1557_v12 = vsub.f32 %v1209_v52, %v810_v11 }
 0x1a9   :  { %v794_v13 = vpop.xlane.xlu0 %793  ;;  %v800_v14 = vpop.xlane.xlu1 %799 }
 0x1aa   :  { %v809_v16 = vmul.f32 0.0625, %v794_v13  ;;  %v812_v17 = vmul.f32 0.0625, %v800_v14  ;;  %v829_v18 = vsel %vm819_vm1, %v1557_v12, 0.0 }
 0x1ab   :  { %v837_v19 = vmul.f32 %v829_v18, %v829_v18 }
 0x1ac   :  { %v1561_v20 = vsub.f32 %v1210_v54, %v809_v16  ;;  %v1563_v21 = vsub.f32 %v1211_v58, %v812_v17 }
 0x1ad   :  { %v798_v22 = vpop.xlane.xlu1 %797  ;;  %846 = vadd.xlane.f32.xlu1 %v837_v19 }
 0x1ae   :  { %v811_v23 = vmul.f32 0.0625, %v798_v22  ;;  %v802_v24 = vpop.xlane.xlu0 %801  ;;  %v831_v25 = vsel %vm819_vm1, %v1563_v21, 0.0  ;;  %v828_v26 = vsel %vm819_vm1, %v1561_v20, 0.0 }
 0x1af   :  { %v813_v27 = vmul.f32 0.0625, %v802_v24  ;;  %v839_v28 = vmul.f32 %v831_v25, %v831_v25  ;;  %v836_v29 = vmul.f32 %v828_v26, %v828_v26 }
 0x1b0   :  { %v1569_v30 = vsub.f32 %v1212_v60, %v811_v23 }
 0x1b1   :  { %v1571_v31 = vsub.f32 %v1214_v2, %v813_v27  ;;  %v804_v32 = vpop.xlane.xlu1 %803  ;;  %850 = vadd.xlane.f32.xlu1 %v839_v28  ;;  %844 = vadd.xlane.f32.xlu0 %v836_v29  ;;  %v1003_v2 = vld [vmem:[%s1620_s2] ss:$0 sm:$0xff]  ;;  %s1330_s2 = smov [#allocation5]  }
 0x1b2   :  { %v814_v8 = vmul.f32 0.0625, %v804_v32  ;;  %v806_v33 = vpop.xlane.xlu0 %805  ;;  %v830_v34 = vsel %vm819_vm1, %v1569_v30, 0.0  ;;  %s935_s3 = sshll.u32 %s1330_s2, 4  ;;  %s936_s3 = int_to_ptr.vmem [resolvable:$true] %s935_s3 }
 0x1b3   :  { %v815_v35 = vmul.f32 0.0625, %v806_v33  ;;  %v838_v36 = vmul.f32 %v830_v34, %v830_v34  ;;  %v832_v37 = vsel %vm819_vm1, %v1571_v31, 0.0  ;;  %s1300_s21 = scalar_lea.vmem %s936_s3, 1024  ;;  %p1305_p9 = scmp.lt.s32.totalorder %s936_s3, %s936_s3 }
 0x1b4   :  { %v1575_v15 = vsub.f32 %v1213_v0, %v814_v8  ;;  %v840_v43 = vmul.f32 %v832_v37, %v832_v37  ;;  %p1301_p8 = scmp.ne.s32.totalorder %s936_s3, %s1300_s21  ;;  %p1306_p10 = scmp.lt.s32.totalorder %s1300_s21, %s1300_s21 }
 0x1b5   :  { %v1579_v38 = vsub.f32 %v1216_v6, %v815_v35  ;;  %v808_v39 = vpop.xlane.xlu1 %807  ;;  %848 = vadd.xlane.f32.xlu0 %v838_v36 }
 0x1b6   :  { %v816_v40 = vmul.f32 0.0625, %v808_v39  ;;  %v833_v41 = vsel %vm819_vm1, %v1575_v15, 0.0  ;;  %p1307_p11 = por %p1306_p10, %p1305_p9 }
 0x1b7   :  { %v841_v42 = vmul.f32 %v833_v41, %v833_v41  ;;  %v834_v45 = vsel %vm819_vm1, %v1579_v38, 0.0 }
 0x1b8   :  { %v1583_v44 = vsub.f32 %v1215_v4, %v816_v40  ;;  %v842_v48 = vmul.f32 %v834_v45, %v834_v45  ;;  %p1308_p12 = pnand %p1307_p11, %p1301_p8 }
 0x1b9   :  { %854 = vadd.xlane.f32.xlu1 %v841_v42  ;;  %852 = vadd.xlane.f32.xlu0 %v840_v43 }
 0x1ba   :  { %v835_v46 = vsel %vm819_vm1, %v1583_v44, 0.0 }
 0x1bb   :  { %v843_v47 = vmul.f32 %v835_v46, %v835_v46 }
 0x1bd   :  { %858 = vadd.xlane.f32.xlu1 %v843_v47  ;;  %856 = vadd.xlane.f32.xlu0 %v842_v48 }
 0x23a   :  { %v847_v49 = vpop.xlane.xlu1 %846 }
 0x23b   :  { %v861_v50 = vmul.f32 0.0625, %v847_v49 }
 0x23d   :  { %v869_v51 = vadd.f32 1e-05, %v861_v50 }
 0x23e   :  { %v851_v52 = vpop.xlane.xlu1 %850  ;;  %v845_v53 = vpop.xlane.xlu0 %844 }
 0x23f   :  { %1262 = vrsqrt.f32 %v869_v51  ;;  %v863_v54 = vmul.f32 0.0625, %v851_v52  ;;  %v860_v55 = vmul.f32 0.0625, %v845_v53 }
 0x241   :  { %v871_v56 = vadd.f32 1e-05, %v863_v54  ;;  %v868_v57 = vadd.f32 1e-05, %v860_v55 }
 0x242   :  { %v849_v58 = vpop.xlane.xlu0 %848 }
 0x243   :  { %1264 = vrsqrt.f32 %v871_v56  ;;  %v862_v59 = vmul.f32 0.0625, %v849_v58 }
 0x244   :  { %1266 = vrsqrt.f32 %v868_v57 }
 0x245   :  { %v870_v60 = vadd.f32 1e-05, %v862_v59 }
 0x246   :  { %v855_v61 = vpop.xlane.xlu1 %854  ;;  %v853_v62 = vpop.xlane.xlu0 %852 }
 0x247   :  { %1268 = vrsqrt.f32 %v870_v60  ;;  %v865_v63 = vmul.f32 0.0625, %v855_v61  ;;  %v864_v0 = vmul.f32 0.0625, %v853_v62 }
 0x249   :  { %v1263_v1 = vpop.eup %1262  ;;  %v873_v3 = vadd.f32 1e-05, %v865_v63  ;;  %v872_v4 = vadd.f32 1e-05, %v864_v0 }
 0x24a   :  { %v885_v5 = vmul.f32 %v1263_v1, %v1557_v12  ;;  %v859_v6 = vpop.xlane.xlu1 %858  ;;  %v857_v7 = vpop.xlane.xlu0 %856 }
 0x24b   :  { %1270 = vrsqrt.f32 %v873_v3  ;;  %v867_v10 = vmul.f32 0.0625, %v859_v6  ;;  %v866_v11 = vmul.f32 0.0625, %v857_v7 }
 0x24c   :  { %v900_v13 = vmul.f32 %v1003_v2, %v885_v5  ;;  %1272 = vrsqrt.f32 %v872_v4 }
 0x24d   :  { %v1265_v14 = vpop.eup %1264  ;;  %v875_v16 = vadd.f32 1e-05, %v867_v10  ;;  %v874_v17 = vadd.f32 1e-05, %v866_v11 }
 0x24e   :  { %v1267_v18 = vpop.eup %1266  ;;  %v915_v19 = vadd.f32 %v1004_v9, %v900_v13  ;;  %v887_v22 = vmul.f32 %v1265_v14, %v1563_v21 }
 0x24f   :  { %v884_v12 = vmul.f32 %v1267_v18, %v1561_v20  ;;  %1274 = vrsqrt.f32 %v875_v16 }
 0x250   :  { %923 = vst [vmem:[#allocation5 + $0x8] sm:$0xff] %v915_v19  ;;  %v902_v23 = vmul.f32 %v1003_v2, %v887_v22  ;;  %1276 = vrsqrt.f32 %v874_v17 }
 0x251   :  { %v1269_v24 = vpop.eup %1268  ;;  %v899_v25 = vmul.f32 %v1003_v2, %v884_v12 }
 0x252   :  { %v917_v26 = vadd.f32 %v1004_v9, %v902_v23  ;;  %v886_v27 = vmul.f32 %v1269_v24, %v1569_v30 }
 0x253   :  { %v914_v28 = vadd.f32 %v1004_v9, %v899_v25 }
 0x254   :  { %925 = vst [vmem:[#allocation5 + $0x18] sm:$0xff] %v917_v26  ;;  %v901_v29 = vmul.f32 %v1003_v2, %v886_v27 }
 0x255   :  { %v1271_v32 = vpop.eup %1270  ;;  %922 = vst [vmem:[#allocation5] sm:$0xff] %v914_v28 }
 0x256   :  { %v1273_v8 = vpop.eup %1272  ;;  %v916_v33 = vadd.f32 %v1004_v9, %v901_v29  ;;  %v889_v21 = vmul.f32 %v1271_v32, %v1575_v15 }
 0x257   :  { %v888_v20 = vmul.f32 %v1273_v8, %v1571_v31 }
 0x258   :  { %924 = vst [vmem:[#allocation5 + $0x10] sm:$0xff] %v916_v33  ;;  %v904_v34 = vmul.f32 %v1003_v2, %v889_v21 }
 0x259   :  { %v1275_v35 = vpop.eup %1274  ;;  %v903_v36 = vmul.f32 %v1003_v2, %v888_v20 }
 0x25a   :  { %v1277_v37 = vpop.eup %1276  ;;  %v919_v39 = vadd.f32 %v1004_v9, %v904_v34  ;;  %v891_v40 = vmul.f32 %v1275_v35, %v1583_v44 }
 0x25b   :  { %v918_v30 = vadd.f32 %v1004_v9, %v903_v36  ;;  %v890_v41 = vmul.f32 %v1277_v37, %v1579_v38 }
 0x25c   :  { %927 = vst [vmem:[#allocation5 + $0x28] sm:$0xff] %v919_v39  ;;  %v906_v42 = vmul.f32 %v1003_v2, %v891_v40 }
 0x25d   :  { %926 = vst [vmem:[#allocation5 + $0x20] sm:$0xff] %v918_v30  ;;  %v905_v43 = vmul.f32 %v1003_v2, %v890_v41 }
 0x25e   :  { %v921_v15 = vadd.f32 %v1004_v9, %v906_v42 }
 0x25f   :  { %v920_v45 = vadd.f32 %v1004_v9, %v905_v43 }
 0x260   :  { %929 = vst [vmem:[#allocation5 + $0x38] sm:$0xff] %v921_v15 }
 0x261   :  { %928 = vst [vmem:[#allocation5 + $0x30] sm:$0xff] %v920_v45 }
 0x262   :  { %1311 = shalt.err (!%p1308_p12)
}
 0x263   :  { %s1312_s24 = scalar_lea.hbm %s1622_s4, 1024 }
 0x264   :  { %p1313_p13 = scmp.ne.s32.totalorder %s1622_s4, %s1312_s24  ;;  %p1316_p0 = scmp.lt.u32.totalorder %s1312_s24, %s1622_s4 }
 0x266   :  { %p1318_p1 = pnand %p1316_p0, %p1313_p13 }
 0x268   :  { %1321 = shalt.err (!%p1318_p1)
}
 0x269   :  { %941 = dma.vmem_to_hbm [thread:$0]  %s936_s3, 1024, %s1622_s4, [#allocation4], %s1327_s25, %s1327_s25, %s1328_s26  }
 0x26a   :  { %1324 = dma.done.wait [#allocation4], 1024  }
 0x26b   :  { %1325 = vsyncadd [#allocation4], 4294966272 }
 0x26c   :  { %945 = vsyncpa [#allocation3], 1 }
 0x26d   :  { %946 = vsyncpa [#allocation4], 1 }

</bundles_post_ra>
